<compile_context>
chip_gen: v7x
topology: tpu7x:2x2x1
jax: 0.10.0
libtpu: 0.0.40
codegen_flags: <defaults>
</compile_context>

<pallas_src>
import jax
import jax.numpy as jnp
from jax.experimental import pallas as pl
from jax.experimental.pallas import tpu as pltpu


def _per_step_vmem_bytes(rows, C, ph, gw, W, K, E):
    """Per-grid-step VMEM footprint (bytes) for a given row-block size."""
    m = rows * gw
    in_bytes = 2 * C * rows * ph * W * 4      # double-buffered f32 input strip
    w_bytes = 1 * K * E * 2                   # single-buffered bf16 weight
    bias_bytes = 1 * E * 4                    # single-buffered f32 bias
    out_bytes = 2 * m * E * 4                 # double-buffered f32 output tile
    lhs_bytes = m * K * 2                     # bf16 im2col scratch
    return in_bytes + w_bytes + bias_bytes + out_bytes + lhs_bytes


def _pick_rows_per_step(gh, gw, ph, C, W, K, E, vmem_budget=20 << 20):
    """Pick R (patch-rows of the image per grid step): a divisor of gh such that
    the (C, R*ph, W) input block and (R*gw, E) output block satisfy the
    (8,128)/full-dim BlockSpec rules AND the per-step VMEM footprint stays under
    `vmem_budget` (hard cap, no silent fallback — matters on v7x's 64 MiB VMEM).
    Prefers the largest R that still gives >= 2 row-steps per image."""
    P = gh * gw
    cands = []
    for d in range(1, gh + 1):
        if gh % d:
            continue
        m = d * gw
        shape_ok = ((d * ph) % 8 == 0 or d == gh) and (m % 8 == 0 or m == P)
        if not shape_ok:
            continue
        if _per_step_vmem_bytes(d, C, ph, gw, W, K, E) > vmem_budget:
            continue
        cands.append(d)
    if not cands:
        raise ValueError(
            "PatchEmbed: no row-block size satisfies the (8,128) layout rules "
            "within the per-step VMEM budget; reduce image size or raise budget.")
    multi = [d for d in cands if gh // d >= 2]
    # TODO(synk): for configs like 224/patch-16 (gh=gw=14) no divisor gives both
    # M % 8 == 0 and >= 2 steps; padding the patch axis to a multiple of 8 would
    # recover megacore parallelism on v7x at the cost of a wrapper slice.
    return max(multi) if multi else max(cands)


def patch_embed(x, weight, bias, patch_size, stride):
    """x: (B, C, H, W) float NCHW.  weight: (E, C, ph, pw) Conv2d weight.  bias: (E,).
    Returns (B, num_patches, E) == proj(x).flatten(2).transpose(1, 2)."""
    B, C, H, W = x.shape
    ph, pw = patch_size
    assert stride == ph == pw, "kernel assumes kernel_size == stride (non-overlapping)"
    assert H % ph == 0 and W % pw == 0, "H/W must be divisible by the patch size"
    gh, gw = H // ph, W // pw
    P = gh * gw
    E = weight.shape[0]
    K = C * ph * pw

    # Conv2d weight (E, C, ph, pw) -> (K, E) matmul weight, bf16 for the MXU.
    w_mat = weight.reshape(E, K).T.astype(jnp.bfloat16)
    b_mat = bias.reshape(1, E).astype(jnp.float32)

    R = _pick_rows_per_step(gh, gw, ph, C, W, K, E)   # patch-rows per grid step
    nr = gh // R
    M = R * gw                                        # output patches per grid step
    cpw = ph * pw                                     # im2col cols per channel

    def kernel(x_ref, w_ref, b_ref, o_ref, lhs_ref):
        # x_ref:   (C, R*ph, W)  input strip (all channels, R patch-rows)
        # w_ref:   (K, E)  bf16  projection weight
        # b_ref:   (1, E)  f32   bias
        # o_ref:   (M, E)        output tile
        # lhs_ref: (M, K)  bf16  im2col scratch
        xv = x_ref[...]                                   # one read of the strip
        for c in range(C):                                # C is small: unrolled
            # One rearrange per channel: (R, ph, gw, pw) -> (R, gw, ph, pw)
            # -> (M, ph*pw), then ONE wide store into the scratch.
            ch = xv[c].reshape(R, ph, gw, pw)
            slab = jnp.swapaxes(ch, 1, 2).reshape(M, cpw)
            lhs_ref[:, c * cpw:(c + 1) * cpw] = slab.astype(jnp.bfloat16)
        acc = jnp.dot(lhs_ref[...], w_ref[...],
                      preferred_element_type=jnp.float32)  # single MXU matmul
        o_ref[...] = (acc + b_ref[...]).astype(o_ref.dtype)

    grid_spec = pltpu.PrefetchScalarGridSpec(
        num_scalar_prefetch=0,
        grid=(B, nr),
        in_specs=[
            pl.BlockSpec((pl.Squeezed(), C, R * ph, W), lambda b, r: (b, 0, r, 0)),
            pl.BlockSpec((K, E), lambda b, r: (0, 0),
                         pipeline_mode=pl.Buffered(1)),
            pl.BlockSpec((1, E), lambda b, r: (0, 0),
                         pipeline_mode=pl.Buffered(1)),
        ],
        out_specs=pl.BlockSpec((pl.Squeezed(), M, E), lambda b, r: (b, r, 0)),
        scratch_shapes=[pltpu.VMEM((M, K), jnp.bfloat16)],
    )

    need = _per_step_vmem_bytes(R, C, ph, gw, W, K, E)
    vmem_limit = int(min(max(need + (8 << 20), 32 << 20), 60 << 20))

    return pl.pallas_call(
        kernel,
        out_shape=jax.ShapeDtypeStruct((B, P, E), x.dtype),
        grid_spec=grid_spec,
        compiler_params=pltpu.CompilerParams(
            dimension_semantics=("parallel", "parallel"),
            vmem_limit_bytes=vmem_limit),
    )(x, w_mat, b_mat)


def _reference(x, weight, bias, stride):
    # Pure-JAX reference: NCHW/OIHW conv, then flatten(2).transpose(1, 2), in f32.
    y = jax.lax.conv_general_dilated(
        x, weight, window_strides=(stride, stride), padding="VALID",
        dimension_numbers=("NCHW", "OIHW", "NCHW"),
    ) + bias[None, :, None, None]
    B, E, gh, gw = y.shape
    return y.reshape(B, E, gh * gw).transpose(0, 2, 1)


if __name__ == "__main__":
    # Small shapes consistent with the module: img 16x16, patch 4, stride 4,
    # 4 input channels, embed_dim 32, batch 2 (frames flattened into batch).
    B, C, H, W = 2, 4, 16, 16
    patch = (4, 4)
    stride = 4
    embed_dim = 32

    key = jax.random.PRNGKey(0)
    kx, kw, kb = jax.random.split(key, 3)
    x = jax.random.normal(kx, (B, C, H, W), dtype=jnp.float32)
    # Deterministic synthetic parameters (not a checkpoint load).
    weight = jax.random.normal(kw, (embed_dim, C, patch[0], patch[1]),
                               dtype=jnp.float32) * 0.02
    bias = jax.random.normal(kb, (embed_dim,), dtype=jnp.float32) * 0.02

    out = patch_embed(x, weight, bias, patch, stride)
    out = jax.block_until_ready(out)

    ref = _reference(x, weight, bias, stride)
    assert out.shape == ref.shape == (B, (H // stride) * (W // stride), embed_dim)
    # bf16 MXU operands (f32 accumulation) vs f32 conv reference -> loosened tol
    # (intentional; see header comment).
    assert jnp.allclose(out, ref, atol=2e-2, rtol=2e-2), (
        float(jnp.max(jnp.abs(out - ref))))

    print("KERNEL_OK")
</pallas_src>

<mosaic_0001>
module attributes {stable_mosaic.version = 11 : i64} {
  func.func @kernel(%arg0: i32, %arg1: i32, %arg2: memref<1x4x8x16xf32, #tpu.memory_space<vmem>>, %arg3: memref<64x32xbf16, #tpu.memory_space<vmem>>, %arg4: memref<1x32xf32, #tpu.memory_space<vmem>>, %arg5: memref<1x8x32xf32, #tpu.memory_space<vmem>>, %arg6: memref<8x64xbf16, #tpu.memory_space<vmem>>) attributes {dimension_semantics = [#tpu.dimension_semantics<parallel>, #tpu.dimension_semantics<parallel>], iteration_bounds = array<i64: 2, 2>, scalar_prefetch = 0 : i64, scratch_operands = 1 : i64, tpu.core_type = #tpu.core_type<tc>, window_params = [{transform_indices = @transform_0, window_bounds = array<i64: 1, 4, 8, 16>}, {pipeline_mode = #tpu.pipeline_mode<synchronous>, transform_indices = @transform_1, window_bounds = array<i64: 64, 32>}, {pipeline_mode = #tpu.pipeline_mode<synchronous>, transform_indices = @transform_2, window_bounds = array<i64: 1, 32>}, {transform_indices = @transform_3, window_bounds = array<i64: 1, 8, 32>}]} {
    %c0 = arith.constant 0 : index
    %c0_0 = arith.constant 0 : index
    %c0_1 = arith.constant 0 : index
    %c0_2 = arith.constant 0 : index
    %0 = vector.load %arg2[%c0, %c0_0, %c0_1, %c0_2] : memref<1x4x8x16xf32, #tpu.memory_space<vmem>>, vector<1x4x8x16xf32>
    %1 = vector.shape_cast %0 : vector<1x4x8x16xf32> to vector<4x8x16xf32>
    %2 = vector.extract_strided_slice %1 {offsets = [0, 0, 0], sizes = [1, 8, 16], strides = [1, 1, 1]} : vector<4x8x16xf32> to vector<1x8x16xf32>
    %3 = vector.shape_cast %2 : vector<1x8x16xf32> to vector<8x16xf32>
    %4 = vector.shape_cast %3 : vector<8x16xf32> to vector<2x4x4x4xf32>
    %5 = tpu.transpose %4, [0, 2, 1, 3] : vector<2x4x4x4xf32> -> vector<2x4x4x4xf32>
    %6 = vector.shape_cast %5 : vector<2x4x4x4xf32> to vector<8x16xf32>
    %7 = arith.truncf %6 : vector<8x16xf32> to vector<8x16xbf16>
    %c0_3 = arith.constant 0 : index
    %c0_4 = arith.constant 0 : index
    %8 = vector.load %arg6[%c0_3, %c0_4] : memref<8x64xbf16, #tpu.memory_space<vmem>>, vector<8x16xbf16>
    tpu.vector_store %arg6[%c0_3, %c0_4], %7 {strides = array<i32>} : memref<8x64xbf16, #tpu.memory_space<vmem>>, vector<8x16xbf16>,
    %9 = vector.extract_strided_slice %1 {offsets = [1, 0, 0], sizes = [1, 8, 16], strides = [1, 1, 1]} : vector<4x8x16xf32> to vector<1x8x16xf32>
    %10 = vector.shape_cast %9 : vector<1x8x16xf32> to vector<8x16xf32>
    %11 = vector.shape_cast %10 : vector<8x16xf32> to vector<2x4x4x4xf32>
    %12 = tpu.transpose %11, [0, 2, 1, 3] : vector<2x4x4x4xf32> -> vector<2x4x4x4xf32>
    %13 = vector.shape_cast %12 : vector<2x4x4x4xf32> to vector<8x16xf32>
    %14 = arith.truncf %13 : vector<8x16xf32> to vector<8x16xbf16>
    %c0_5 = arith.constant 0 : index
    %c16 = arith.constant 16 : index
    %15 = vector.load %arg6[%c0_5, %c16] : memref<8x64xbf16, #tpu.memory_space<vmem>>, vector<8x16xbf16>
    tpu.vector_store %arg6[%c0_5, %c16], %14 {strides = array<i32>} : memref<8x64xbf16, #tpu.memory_space<vmem>>, vector<8x16xbf16>,
    %16 = vector.extract_strided_slice %1 {offsets = [2, 0, 0], sizes = [1, 8, 16], strides = [1, 1, 1]} : vector<4x8x16xf32> to vector<1x8x16xf32>
    %17 = vector.shape_cast %16 : vector<1x8x16xf32> to vector<8x16xf32>
    %18 = vector.shape_cast %17 : vector<8x16xf32> to vector<2x4x4x4xf32>
    %19 = tpu.transpose %18, [0, 2, 1, 3] : vector<2x4x4x4xf32> -> vector<2x4x4x4xf32>
    %20 = vector.shape_cast %19 : vector<2x4x4x4xf32> to vector<8x16xf32>
    %21 = arith.truncf %20 : vector<8x16xf32> to vector<8x16xbf16>
    %c0_6 = arith.constant 0 : index
    %c32 = arith.constant 32 : index
    %22 = vector.load %arg6[%c0_6, %c32] : memref<8x64xbf16, #tpu.memory_space<vmem>>, vector<8x16xbf16>
    tpu.vector_store %arg6[%c0_6, %c32], %21 {strides = array<i32>} : memref<8x64xbf16, #tpu.memory_space<vmem>>, vector<8x16xbf16>,
    %23 = vector.extract_strided_slice %1 {offsets = [3, 0, 0], sizes = [1, 8, 16], strides = [1, 1, 1]} : vector<4x8x16xf32> to vector<1x8x16xf32>
    %24 = vector.shape_cast %23 : vector<1x8x16xf32> to vector<8x16xf32>
    %25 = vector.shape_cast %24 : vector<8x16xf32> to vector<2x4x4x4xf32>
    %26 = tpu.transpose %25, [0, 2, 1, 3] : vector<2x4x4x4xf32> -> vector<2x4x4x4xf32>
    %27 = vector.shape_cast %26 : vector<2x4x4x4xf32> to vector<8x16xf32>
    %28 = arith.truncf %27 : vector<8x16xf32> to vector<8x16xbf16>
    %c0_7 = arith.constant 0 : index
    %c48 = arith.constant 48 : index
    %29 = vector.load %arg6[%c0_7, %c48] : memref<8x64xbf16, #tpu.memory_space<vmem>>, vector<8x16xbf16>
    tpu.vector_store %arg6[%c0_7, %c48], %28 {strides = array<i32>} : memref<8x64xbf16, #tpu.memory_space<vmem>>, vector<8x16xbf16>,
    %c0_8 = arith.constant 0 : index
    %c0_9 = arith.constant 0 : index
    %30 = vector.load %arg6[%c0_8, %c0_9] : memref<8x64xbf16, #tpu.memory_space<vmem>>, vector<8x64xbf16>
    %c0_10 = arith.constant 0 : index
    %c0_11 = arith.constant 0 : index
    %31 = vector.load %arg3[%c0_10, %c0_11] : memref<64x32xbf16, #tpu.memory_space<vmem>>, vector<64x32xbf16>
    %cst = arith.constant dense<0.000000e+00> : vector<8x32xf32>
    %32 = tpu.matmul %30, %31, %cst {dimension_numbers = #tpu.dot_dimension_numbers<[1], [0], [0], [1], [0, 0, 1, 1], [], []>} : vector<8x64xbf16>, vector<64x32xbf16>, vector<8x32xf32> -> vector<8x32xf32>
    %c0_12 = arith.constant 0 : index
    %c0_13 = arith.constant 0 : index
    %33 = vector.load %arg4[%c0_12, %c0_13] : memref<1x32xf32, #tpu.memory_space<vmem>>, vector<1x32xf32>
    %34 = vector.broadcast %33 : vector<1x32xf32> to vector<8x32xf32>
    %35 = arith.addf %32, %34 : vector<8x32xf32>
    %c0_14 = arith.constant 0 : index
    %c0_15 = arith.constant 0 : index
    %c0_16 = arith.constant 0 : index
    %36 = vector.load %arg5[%c0_14, %c0_15, %c0_16] : memref<1x8x32xf32, #tpu.memory_space<vmem>>, vector<1x8x32xf32>
    %37 = vector.shape_cast %36 : vector<1x8x32xf32> to vector<8x32xf32>
    %38 = vector.shape_cast %35 : vector<8x32xf32> to vector<1x8x32xf32>
    tpu.vector_store %arg5[%c0_14, %c0_15, %c0_16], %38 {strides = array<i32>} : memref<1x8x32xf32, #tpu.memory_space<vmem>>, vector<1x8x32xf32>,
    return
  }
  func.func @transform_0(%arg0: i32, %arg1: i32) -> (i32, i32, i32, i32) {
    %c0_i32 = arith.constant 0 : i32
    %c0_i32_0 = arith.constant 0 : i32
    %c0_i32_1 = arith.constant 0 : i32
    return %arg0, %c0_i32, %arg1, %c0_i32_0 : i32, i32, i32, i32
  }
  func.func @transform_1(%arg0: i32, %arg1: i32) -> (i32, i32) {
    %c0_i32 = arith.constant 0 : i32
    %c0_i32_0 = arith.constant 0 : i32
    %c0_i32_1 = arith.constant 0 : i32
    return %c0_i32, %c0_i32_0 : i32, i32
  }
  func.func @transform_2(%arg0: i32, %arg1: i32) -> (i32, i32) {
    %c0_i32 = arith.constant 0 : i32
    %c0_i32_0 = arith.constant 0 : i32
    %c0_i32_1 = arith.constant 0 : i32
    return %c0_i32, %c0_i32_0 : i32, i32
  }
  func.func @transform_3(%arg0: i32, %arg1: i32) -> (i32, i32, i32) {
    %c0_i32 = arith.constant 0 : i32
    %c0_i32_0 = arith.constant 0 : i32
    return %arg0, %arg1, %c0_i32 : i32, i32, i32
  }
}

</mosaic_0001>

<bundles_post_ra>
// kernel: tpu_custom_call.1
= control target key start
LH: loop header
LB: loop body
LE: loop exit
PB: predicated region body
PF: predicated region fallthrough
CT: control target
= control target key end

     0   :  { %8 = vsyncpa [#allocation4], 0  ;;  %s2106_s0 = inlined_call_operand.hbm [shape: f32[2,4,16,16], index: 0, kind: input, shape index: {}]   ;;  %s2107_s1 = inlined_call_operand.vmem [shape: bf16[64,32], index: 1, kind: input, shape index: {}]   ;;  %s2108_s2 = inlined_call_operand.vmem [shape: f32[1,32], index: 2, kind: input, shape index: {}]   ;;  %s2109_s3 = inlined_call_operand.hbm [shape: f32[2,16,32], index: 3, kind: output, shape index: {}]  }
   0x1   :  { %10 = vsyncpa [#allocation4 + $0x1], 0 }
   0x2   :  { %11 = vsyncpa [#allocation5], 0 }
   0x3   :  { %13 = vsyncpa [#allocation5 + $0x1], 0  ;;  %s1688_s12 = smov 0   ;;  %s1690_s13 = smov 0  }
   0x4   :  { %s1692_s14 = smov 0   ;;  %s1694_s15 = smov 0  }
   0x5   :  { %s1696_s16 = smov 0   ;;  %s1698_s17 = smov 0  }
   0x6   :  { %s1700_s18 = smov 0   ;;  %s1702_s19 = smov 0  }
   0x7 LB: > { %s1347_s20 = sadd.s32 4294967295, %s1648_s19   ;;  %s1348_s21 = sadd.s32 4294967294, %s1648_s19   ;;  %s1648_s19 = sphi %s1702_s19, %s19_s19   ;;  %s1644_s18 = sphi %s1700_s18, %s2127_s18   ;;  %s1640_s17 = sphi %s1698_s17, %s2126_s17   ;;  %s1636_s16 = sphi %s1696_s16, %s2125_s16   ;;  %s1632_s15 = sphi %s1694_s15, %s2124_s15   ;;  %s1628_s14 = sphi %s1692_s14, %s2123_s14   ;;  %s1624_s13 = sphi %s1690_s13, %s2122_s13   ;;  %s1620_s12 = sphi %s1688_s12, %s2121_s12  }
   0x8   : > { %s28_s22 = sadd.s32 1, %s1640_s17  ;;  %s31_s23 = sadd.s32 1, %s1644_s18 }
   0x9   : > { %p29_p0 = scmp.ge.s32.totalorder %s28_s22, 2  ;;  %s40_s24 = sadd.s32 1, %s1628_s14 }
   0xa   : > { %p47_p1 = scmp.ne.s32.totalorder %s1628_s14, %s1624_s13  ;;  %p48_p2 = scmp.eq.s32.totalorder %s1648_s19, 0 }
   0xb   : > { %s2129_s22 = smov (%p29_p0, %s28_s22), 0  ;;  %s2131_s23 = smov (!%p29_p0, %s31_s23), %s1644_s18 }
   0xc   : > { %s36_s25 = ssub.s32 %s1640_s17, %s2129_s22  ;;  %p1741_p3 = por %p48_p2, %p47_p1 }
   0xd   : > { %p33_p4 = scmp.ge.s32.totalorder %s2131_s23, 2  ;;  %p53_p5 = scmp.ne.s32.totalorder %s1624_s13, %s1620_s12 }
   0xe   : > { %p54_p6 = scmp.eq.s32.totalorder %s1347_s20, 0  ;;  %p121_p7 = scmp.eq.s32.totalorder %s1347_s20, 3 }
   0xf   : > { %s2133_s23 = smov (%p33_p4, %s2131_s23), 0  ;;  %p127_p10 = scmp.eq.s32.totalorder %s1348_s21, 3 }
  0x10   : > { %2113 = sst [smem:[#allocation9_spill]] %s2133_s23  ;;  %p1749_p8 = por %p54_p6, %p53_p5 }
  0x11   : > { %p1753_p9 = por %p121_p7, %p47_p1  ;;  %s35_s29 = ssub.s32 %s1644_s18, %s2133_s23 }
  0x12   : > { %s37_s30 = sor.u32 %s36_s25, %s35_s29  ;;  %p1759_p12 = por %p127_p10, %p53_p5 }
  0x13   : > { %s2115_s28 = scalar_select %p1753_p9, 1, 0 }
  0x14   : > { %p38_p11 = scmp.eq.s32.totalorder %s37_s30, 0  ;;  %p1419_p13 = scmp.lt.s32.totalorder %s1648_s19, 4 }
  0x15   : > { %s2116_s4 = scalar_select %p1759_p12, 1, 0 }
  0x16   : > { %s153_s5 = sand.u32 1, %s1628_s14   ;;  %s1352_s8 = sshll.u32 %s1644_s18, 3 }
  0x17   : > { %s1766_s6 = scalar_select %p38_p11, %s1628_s14, %s40_s24  }
  0x18   : > { %s1351_s7 = sshll.u32 %s153_s5, 5  ;;  %s162_s9 = sadd.s32 %s1640_s17, %s1352_s8 }
  0x19   : > { %s157_s10 = scalar_lea.vmem [#allocation3], %s1351_s7  ;;  %s1353_s20 = sshll.u32 %s162_s9, 7 }
  0x1a   : > { %s165_s11 = sshll.u32 %s157_s10, 4  ;;  %s1775_s25 = scalar_lea.hbm %s2106_s0, %s1353_s20  ;;  %s1770_s11 = int_to_ptr.vmem [resolvable:$true] %s165_s11 }
  0x1b   : > { %p1779_p0 = pnand %p1419_p13, %p1741_p3  ;;  %s1783_s29 = scalar_lea.sflag [#allocation4], %s153_s5 }
  0x1c   : > { %s1520_s30 = scalar_lea.hbm %s1775_s25, 512  ;;  %s1525_s7 = scalar_lea.hbm %s2106_s0, 2048 }
  0x1d   : > { %p1521_p1 = scmp.ne.s32.totalorder %s1775_s25, %s1520_s30  ;;  %p1522_p2 = pneg %p1779_p0 }
  0x1e   : > { %p1526_p3 = scmp.lt.u32.totalorder %s1775_s25, %s2106_s0  ;;  %p1527_p6 = scmp.lt.u32.totalorder %s1525_s7, %s1520_s30 }
  0x1f   : > { %p1523_p4 = pnand %p1522_p2, %p1521_p1  ;;  %p1529_p10 = scmp.lt.u32.totalorder %s1520_s30, %s1775_s25 }
  0x20   : > { %p1528_p7 = por %p1527_p6, %p1526_p3 }
  0x21   : > { %p1524_p5 = pneg %p1523_p4 }
  0x22   : > { %p1530_p11 = por %p1529_p10, %p1528_p7 }
  0x24   : > { %p1531_p13 = pnand %p1530_p11, %p1524_p5 }
  0x26   : > { %1534 = shalt.err (!%p1531_p13)
}
  0x27   : > { %s1535_s5 = scalar_lea.vmem %s1770_s11, 512  ;;  %s1650_s10 = smov [#allocation3]  }
  0x28   : > { %p1536_p1 = scmp.ne.s32.totalorder %s1770_s11, %s1535_s5  ;;  %s1540_s20 = sshll.u32 %s1650_s10, 4  ;;  %s1541_s20 = int_to_ptr.vmem [resolvable:$false] %s1540_s20 }
  0x29   : > { %s1542_s21 = scalar_lea.vmem %s1541_s20, 1024  ;;  %p1543_p9 = scmp.lt.s32.totalorder %s1770_s11, %s1541_s20 }
  0x2a   : > { %p1538_p4 = pnand %p1536_p1, %p1522_p2  ;;  %p1544_p3 = scmp.lt.s32.totalorder %s1542_s21, %s1535_s5 }
  0x2c   : > { %p1539_p12 = pneg %p1538_p4  ;;  %p1545_p6 = por %p1544_p3, %p1543_p9 }
  0x2e   : > { %p1546_p7 = pnand %p1545_p6, %p1539_p12 }
  0x30   : > { %1549 = shalt.err (!%p1546_p7)
}
  0x31   : > { %s1651_s30 = smov 256   ;;  %s1652_s23 = smov 128  }
  0x32   : > { %s1653_s26 = smov 8   ;;  %p1354_p2 = scmp.ge.s32.totalorder %s1648_s19, 1 }
  0x33   : > { %1414 = dma.hbm_to_vmem [thread:$0]  (!%p1779_p0), %s1775_s25, 512, %s1770_s11, %s1783_s29, %s1651_s30, %s1652_s23, %s1653_s26  }
  0x34   : > { %p173_p5 = scmp.lt.s32.totalorder %s1648_s19, 5 }
  0x36   : > { %p174_p10 = pnand %p1354_p2, %p173_p5 }
  0x37   : > { %s1814_s7 = sand.u32 (!%p174_p10), 1, %s1624_s13  }
  0x38   : > { %177 = sbr.rel (%p174_p10) target bundleno = 711 (0x2c7), region = 32  ;;  %s1355_s8 = sshll.u32 (!%p174_p10), %s1814_s7, 5 }
  0x39   : > { %s180_s9 = scalar_lea.sflag (!%p174_p10), [#allocation4], %s1814_s7  ;;  %s183_s5 = scalar_lea.vmem (!%p174_p10), [#allocation3], %s1355_s8 }
  0x3f   : > { %1611 = dma.done.wait (%p1749_p8), %s180_s9, 512  }
  0x40   : > { %1613 = vsyncadd (%p1749_p8), %s180_s9, 4294966784  ;;  %v208_v0 = vld [vmem:[%s183_s5 + $0x8] sm:$0xff]  ;;  %s1654_s11 = smov 116   ;;  %s1655_s25 = smov 124   ;;  %v209_v1 = vld [vmem:[%s183_s5 + $0x10] sm:$0xff]  ;;  %v226_v6 = vlaneseq  ;;  %vm437_vm0 = vcmask 31744  }
  0x41   : > { %453 = vrot.lane.b32.xlu1 %v208_v0, %s1654_s11  ;;  %447 = vrot.lane.b32.xlu0 %v208_v0, %s1655_s25  ;;  %s1656_s24 = smov 120   ;;  %v1822_v2 = vld [vmem:[%s183_s5 + $0x18] sm:$0xff]  ;;  %v1826_v3 = vld [vmem:[%s183_s5] sm:$0xff]  ;;  %v1657_v4 = vmov 1983009808   ;;  %s1659_s27 = smov 4  }
  0x42   : > { %v224_v5 = vunpack.c.l.s4 %v1657_v4  ;;  %v1658_v7 = vmov 1934713408   ;;  %v227_v10 = vshrl.u32 %v226_v6, 7  ;;  %s1660_s29 = smov 8   ;;  %s1661_s10 = smov 12   ;;  %vm439_vm1 = vcmask 64512  }
  0x43   : > { %v256_v8 = vunpack.c.l.s4 %v1658_v7  ;;  %vm1663_vm2 = vmmov 0   ;;  %vm441_vm3 = vcmask 97280   ;;  %vm444_vm4 = vcmask 125952   ;;  %p2118_p9 = scmp.ne.s32.totalorder %s2115_s28, 0 }
  0x44   : > { %v225_v9 = vunpack.c.0.s8 %v224_v5  ;;  %vm682_vm5 = vcmask 257152   ;;  %vm920_vm6 = vcmask 388352   ;;  %vm1158_vm7 = vcmask 519552  }
  0x45   : > { %685 = vrot.lane.b32.xlu1 %v209_v1, %s1655_s25  ;;  %450 = vrot.lane.b32.xlu0 %v208_v0, %s1656_s24  ;;  %v257_v13 = vunpack.c.0.s8 %v256_v8  ;;  %vm1200_vm8 = vcmask 523264   ;;  %vm1244_vm9 = vcmask 261120  }
  0x46   : > { %v1832_v14 = vsub.s32 %v225_v9, %v227_v10 }
  0x47   : > { %v1834_v21 = vsub.s32 %v257_v13, %v227_v10 }
  0x49   : > { %691 = vrot.lane.b32.xlu1 %v209_v1, %s1654_s11  ;;  %688 = vrot.lane.b32.xlu0 %v209_v1, %s1656_s24 }
  0x4d   : > { %923 = vrot.lane.b32.xlu0 %v1822_v2, %s1655_s25  ;;  %926 = vrot.lane.b32.xlu1 %v1822_v2, %s1656_s24 }
  0x51   : > { %929 = vrot.lane.b32.xlu0 %v1822_v2, %s1654_s11  ;;  %212 = vrot.lane.b32.xlu1 %v1826_v3, %s1655_s25  ;;  %s1665_s25 = smov 16  }
  0x55   : > { %215 = vrot.lane.b32.xlu0 %v1826_v3, %s1656_s24  ;;  %218 = vrot.lane.b32.xlu1 %v1826_v3, %s1654_s11  ;;  %s1664_s11 = smov 32   ;;  %s1666_s24 = smov 48  }
  0xb3   : > { %v454_v11 = vpop.permute.xlu1 %453  ;;  %v448_v12 = vpop.permute.xlu0 %447 }
  0xb4   : > { %v472_v15 = vcombine.low %v448_v12, %v454_v11  ;;  %v473_v16 = vcombine.high %v448_v12, %v454_v11 }
  0xb6   : > { %v480_v22 = vrot.slane %v472_v15, %v1832_v14  ;;  %v487_v23 = vrot.slane %v473_v16, %v1832_v14 }
  0xb7   : > { %v686_v17 = vpop.permute.xlu1 %685  ;;  %v451_v18 = vpop.permute.xlu0 %450 }
  0xb8   : > { %v456_v19 = vcombine.low %v208_v0, %v451_v18  ;;  %v457_v20 = vcombine.high %v208_v0, %v451_v18 }
  0xba   : > { %v464_v24 = vrot.slane %v456_v19, %v1832_v14  ;;  %v471_v25 = vrot.slane %v457_v20, %v1832_v14 }
  0xbb   : > { %v692_v26 = vpop.permute.xlu1 %691  ;;  %v689_v27 = vpop.permute.xlu0 %688 }
  0xbc   : > { %v488_v28 = vcombine.low %v464_v24, %v480_v22  ;;  %v489_v29 = vcombine.high %v464_v24, %v480_v22  ;;  %v504_v30 = vcombine.low %v471_v25, %v487_v23  ;;  %v505_v31 = vcombine.high %v471_v25, %v487_v23 }
  0xbd   : > { %v710_v32 = vcombine.low %v686_v17, %v692_v26  ;;  %v711_v33 = vcombine.high %v686_v17, %v692_v26  ;;  %v694_v34 = vcombine.low %v209_v1, %v689_v27  ;;  %v695_v35 = vcombine.high %v209_v1, %v689_v27 }
  0xbe   : > { %v496_v36 = vrot.slane %v488_v28, %v1834_v21  ;;  %v503_v37 = vrot.slane %v489_v29, %v1834_v21  ;;  %v512_v38 = vrot.slane %v504_v30, %v1834_v21  ;;  %v519_v39 = vrot.slane %v505_v31, %v1834_v21 }
  0xbf   : > { %v718_v40 = vrot.slane %v710_v32, %v1832_v14  ;;  %v725_v41 = vrot.slane %v711_v33, %v1832_v14  ;;  %v702_v42 = vrot.slane %v694_v34, %v1832_v14  ;;  %v709_v43 = vrot.slane %v695_v35, %v1832_v14  ;;  %v924_v44 = vpop.permute.xlu0 %923  ;;  %v927_v45 = vpop.permute.xlu1 %926 }
  0xc0   : > { %v524_v46 = vcombine.low %v496_v36, %v503_v37  ;;  %v1361_v47 = vcombine.high %v496_v36, %v503_v37  ;;  %v558_v48 = vcombine.low %v512_v38, %v519_v39  ;;  %v1362_v49 = vcombine.high %v512_v38, %v519_v39 }
  0xc1   : > { %v726_v50 = vcombine.low %v702_v42, %v718_v40  ;;  %v727_v51 = vcombine.high %v702_v42, %v718_v40  ;;  %v742_v52 = vcombine.low %v709_v43, %v725_v41  ;;  %v743_v53 = vcombine.high %v709_v43, %v725_v41 }
  0xc2   : > { %v531_v54 = vrot.slane %v524_v46, %v1832_v14  ;;  %v539_v55 = vrot.slane %v1361_v47, %v1832_v14  ;;  %v565_v56 = vrot.slane %v558_v48, %v1832_v14  ;;  %v573_v57 = vrot.slane %v1362_v49, %v1832_v14 }
  0xc3   : > { %v734_v58 = vrot.slane %v726_v50, %v1834_v21  ;;  %v741_v59 = vrot.slane %v727_v51, %v1834_v21  ;;  %v750_v60 = vrot.slane %v742_v52, %v1834_v21  ;;  %v757_v61 = vrot.slane %v743_v53, %v1834_v21  ;;  %v213_v4 = vpop.permute.xlu1 %212  ;;  %v930_v9 = vpop.permute.xlu0 %929 }
  0xc4   : > { %v540_v62 = vcombine.low %v531_v54, %v539_v55  ;;  %v541_v63 = vcombine.high %v531_v54, %v539_v55  ;;  %v574_v0 = vcombine.low %v565_v56, %v573_v57  ;;  %v575_v1 = vcombine.high %v565_v56, %v573_v57 }
  0xc5   : > { %v762_v5 = vcombine.low %v734_v58, %v741_v59  ;;  %v1366_v6 = vcombine.high %v734_v58, %v741_v59  ;;  %v796_v7 = vcombine.low %v750_v60, %v757_v61  ;;  %v1367_v8 = vcombine.high %v750_v60, %v757_v61 }
  0xc6   : > { %v1857_v10 = vrot.slane %v540_v62, %v1834_v21  ;;  %v1860_v11 = vrot.slane %v541_v63, %v1834_v21  ;;  %v1863_v12 = vrot.slane %v574_v0, %v1834_v21  ;;  %v1866_v13 = vrot.slane %v575_v1, %v1834_v21 }
  0xc7   : > { %v769_v15 = vrot.slane %v762_v5, %v1832_v14  ;;  %v777_v16 = vrot.slane %v1366_v6, %v1832_v14  ;;  %v803_v17 = vrot.slane %v796_v7, %v1832_v14  ;;  %v811_v18 = vrot.slane %v1367_v8, %v1832_v14  ;;  %v216_v32 = vpop.permute.xlu0 %215  ;;  %v219_v33 = vpop.permute.xlu1 %218 }
  0xc8   : > { %v932_v19 = vcombine.low %v1822_v2, %v927_v45  ;;  %v933_v20 = vcombine.high %v1822_v2, %v927_v45  ;;  %v948_v22 = vcombine.low %v924_v44, %v930_v9  ;;  %v949_v23 = vcombine.high %v924_v44, %v930_v9 }
  0xc9   : > { %v778_v24 = vcombine.low %v769_v15, %v777_v16  ;;  %v779_v25 = vcombine.high %v769_v15, %v777_v16  ;;  %v812_v26 = vcombine.low %v803_v17, %v811_v18  ;;  %v813_v27 = vcombine.high %v803_v17, %v811_v18 }
  0xca   : > { %v940_v28 = vrot.slane %v932_v19, %v1832_v14  ;;  %v947_v29 = vrot.slane %v933_v20, %v1832_v14  ;;  %v956_v30 = vrot.slane %v948_v22, %v1832_v14  ;;  %v963_v31 = vrot.slane %v949_v23, %v1832_v14 }
  0xcb   : > { %v1879_v34 = vrot.slane %v778_v24, %v1834_v21  ;;  %v1882_v2 = vrot.slane %v779_v25, %v1834_v21  ;;  %v1885_v35 = vrot.slane %v812_v26, %v1834_v21  ;;  %v1888_v36 = vrot.slane %v813_v27, %v1834_v21 }
  0xcc   : > { %v964_v37 = vcombine.low %v940_v28, %v956_v30  ;;  %v965_v38 = vcombine.high %v940_v28, %v956_v30  ;;  %v980_v39 = vcombine.low %v947_v29, %v963_v31  ;;  %v981_v40 = vcombine.high %v947_v29, %v963_v31 }
  0xcd   : > { %v221_v41 = vcombine.low %v1826_v3, %v216_v32  ;;  %v222_v42 = vcombine.high %v1826_v3, %v216_v32  ;;  %v237_v43 = vcombine.low %v213_v4, %v219_v33  ;;  %v238_v44 = vcombine.high %v213_v4, %v219_v33 }
  0xce   : > { %v972_v45 = vrot.slane %v964_v37, %v1834_v21  ;;  %v979_v46 = vrot.slane %v965_v38, %v1834_v21  ;;  %v988_v47 = vrot.slane %v980_v39, %v1834_v21  ;;  %v995_v48 = vrot.slane %v981_v40, %v1834_v21 }
  0xcf   : > { %v229_v49 = vrot.slane %v221_v41, %v1832_v14  ;;  %v236_v50 = vrot.slane %v222_v42, %v1832_v14  ;;  %v245_v51 = vrot.slane %v237_v43, %v1832_v14  ;;  %v252_v52 = vrot.slane %v238_v44, %v1832_v14 }
  0xd0   : > { %v1000_v53 = vcombine.low %v972_v45, %v979_v46  ;;  %v1371_v3 = vcombine.high %v972_v45, %v979_v46  ;;  %v1034_v54 = vcombine.low %v988_v47, %v995_v48  ;;  %v1372_v55 = vcombine.high %v988_v47, %v995_v48 }
  0xd1   : > { %v253_v56 = vcombine.low %v229_v49, %v245_v51  ;;  %v254_v57 = vcombine.high %v229_v49, %v245_v51  ;;  %v269_v58 = vcombine.low %v236_v50, %v252_v52  ;;  %v270_v59 = vcombine.high %v236_v50, %v252_v52 }
  0xd2   : > { %v1007_v60 = vrot.slane %v1000_v53, %v1832_v14  ;;  %v1015_v61 = vrot.slane %v1371_v3, %v1832_v14  ;;  %v1041_v62 = vrot.slane %v1034_v54, %v1832_v14  ;;  %v1049_v63 = vrot.slane %v1372_v55, %v1832_v14 }
  0xd3   : > { %v261_v0 = vrot.slane %v253_v56, %v1834_v21  ;;  %v268_v1 = vrot.slane %v254_v57, %v1834_v21  ;;  %v277_v4 = vrot.slane %v269_v58, %v1834_v21  ;;  %v284_v5 = vrot.slane %v270_v59, %v1834_v21 }
  0xd4   : > { %v1016_v6 = vcombine.low %v1007_v60, %v1015_v61  ;;  %v1017_v7 = vcombine.high %v1007_v60, %v1015_v61  ;;  %v1050_v8 = vcombine.low %v1041_v62, %v1049_v63  ;;  %v1051_v9 = vcombine.high %v1041_v62, %v1049_v63 }
  0xd5   : > { %v289_v15 = vcombine.low %v261_v0, %v268_v1  ;;  %v1357_v16 = vcombine.high %v261_v0, %v268_v1  ;;  %v323_v17 = vcombine.low %v277_v4, %v284_v5  ;;  %v1358_v18 = vcombine.high %v277_v4, %v284_v5 }
  0xd6   : > { %v592_v19 = vcombine.low %v1857_v10, %v1860_v11  ;;  %v1363_v20 = vcombine.high %v1857_v10, %v1860_v11  ;;  %v608_v22 = vcombine.low %v1863_v12, %v1866_v13  ;;  %v1364_v23 = vcombine.high %v1863_v12, %v1866_v13 }
  0xd7   : > { %v296_v24 = vrot.slane %v289_v15, %v1832_v14  ;;  %v304_v25 = vrot.slane %v1357_v16, %v1832_v14  ;;  %v1919_v26 = vrot.slane %v323_v17, %v1832_v14  ;;  %v1922_v27 = vrot.slane %v1358_v18, %v1832_v14 }
  0xd8   : > { %v599_v28 = vrot.slane %v592_v19, %v1832_v14  ;;  %v607_v10 = vrot.slane %v1363_v20, %v1832_v14  ;;  %v615_v11 = vrot.slane %v608_v22, %v1832_v14  ;;  %v623_v29 = vrot.slane %v1364_v23, %v1832_v14 }
  0xd9   : > { %v305_v30 = vcombine.low %v296_v24, %v304_v25  ;;  %v306_v12 = vcombine.high %v296_v24, %v304_v25  ;;  %v339_v13 = vcombine.low %v1919_v26, %v1922_v27  ;;  %v340_v31 = vcombine.high %v1919_v26, %v1922_v27 }
  0xda   : > { %v624_v32 = vcombine.low %v599_v28, %v607_v10  ;;  %v640_v33 = vcombine.low %v615_v11, %v623_v29  ;;  %v830_v37 = vcombine.low %v1879_v34, %v1882_v2  ;;  %v1368_v38 = vcombine.high %v1879_v34, %v1882_v2 }
  0xdb   : > { %v846_v39 = vcombine.low %v1885_v35, %v1888_v36  ;;  %v1369_v40 = vcombine.high %v1885_v35, %v1888_v36  ;;  %v625_v41 = vcombine.high %v599_v28, %v607_v10  ;;  %v641_v42 = vcombine.high %v615_v11, %v623_v29 }
  0xdc   : > { %v1941_v43 = vrot.slane %v624_v32, %v1834_v21  ;;  %v1944_v44 = vrot.slane %v640_v33, %v1834_v21  ;;  %v837_v45 = vrot.slane %v830_v37, %v1832_v14  ;;  %v845_v46 = vrot.slane %v1368_v38, %v1832_v14 }
  0xdd   : > { %v853_v34 = vrot.slane %v846_v39, %v1832_v14  ;;  %v861_v2 = vrot.slane %v1369_v40, %v1832_v14  ;;  %v639_v47 = vrot.slane %v625_v41, %v1834_v21  ;;  %v655_v35 = vrot.slane %v641_v42, %v1834_v21 }
  0xde   : > { %v656_v36 = vcombine.low %v1941_v43, %v1944_v44  ;;  %v657_v48 = vcombine.high %v1941_v43, %v1944_v44  ;;  %v862_v49 = vcombine.low %v837_v45, %v845_v46  ;;  %v863_v50 = vcombine.high %v837_v45, %v845_v46 }
  0xdf   : > { %v878_v51 = vcombine.low %v853_v34, %v861_v2  ;;  %v658_v52 = vcombine.low %v639_v47, %v655_v35  ;;  %v879_v53 = vcombine.high %v853_v34, %v861_v2  ;;  %v659_v3 = vcombine.high %v639_v47, %v655_v35  ;;  %v1516_v35 = vld [vmem:[%s2107_s1] sm:$0xff]  }
  0xe0   : > { %v1957_v54 = vrot.slane %v862_v49, %v1834_v21  ;;  %v877_v55 = vrot.slane %v863_v50, %v1834_v21  ;;  %v1024_v56 = vrot.slane %v1016_v6, %v1834_v21  ;;  %v1031_v57 = vrot.slane %v1017_v7, %v1834_v21 }
  0xe1   : > { %v1963_v58 = vrot.slane %v878_v51, %v1834_v21  ;;  %v893_v59 = vrot.slane %v879_v53, %v1834_v21  ;;  %v1058_v60 = vrot.slane %v1050_v8, %v1834_v21  ;;  %v1065_v61 = vrot.slane %v1051_v9, %v1834_v21 }
  0xe2   : > { %v1068_v62 = vcombine.low %v1024_v56, %v1031_v57  ;;  %v1373_v63 = vcombine.high %v1024_v56, %v1031_v57  ;;  %v313_v0 = vrot.slane %v305_v30, %v1834_v21  ;;  %v320_v1 = vrot.slane %v306_v12, %v1834_v21 }
  0xe3   : > { %v895_v4 = vcombine.high %v1957_v54, %v1963_v58  ;;  %v894_v5 = vcombine.low %v1957_v54, %v1963_v58  ;;  %v896_v6 = vcombine.low %v877_v55, %v893_v59  ;;  %v897_v7 = vcombine.high %v877_v55, %v893_v59 }
  0xe4   : > { %v1075_v15 = vrot.slane %v1068_v62, %v1832_v14  ;;  %v1083_v8 = vrot.slane %v1373_v63, %v1832_v14  ;;  %v1084_v16 = vcombine.low %v1058_v60, %v1065_v61  ;;  %v1374_v9 = vcombine.high %v1058_v60, %v1065_v61  ;;  %v1518_v61 = vld [vmem:[%s2107_s1 + $0x10] sm:$0xff]  }
  0xe5   : > { %v1501_v17 = vpack.i.bf16 %v895_v4, %v657_v48  ;;  %v1506_v18 = vpack.i.bf16 %v896_v6, %v658_v52  ;;  %v1511_v19 = vpack.i.bf16 %v897_v7, %v659_v3  ;;  %v347_v20 = vrot.slane %v339_v13, %v1834_v21  ;;  %v1519_v4 = vld [vmem:[%s2107_s1 + $0x18] sm:$0xff]  }
  0xe6   : > { %v1091_v22 = vrot.slane %v1084_v16, %v1832_v14  ;;  %v1099_v23 = vrot.slane %v1374_v9, %v1832_v14  ;;  %v1100_v24 = vcombine.low %v1075_v15, %v1083_v8  ;;  %v1101_v25 = vcombine.high %v1075_v15, %v1083_v8 }
  0xe7   : > { %1502 = vrot.lane.b32.xlu0 %v1501_v17, %s1659_s27  ;;  %1507 = vrot.lane.b32.xlu1 %v1506_v18, %s1660_s29  ;;  %v354_v26 = vrot.slane %v340_v31, %v1834_v21  ;;  %v357_v27 = vcombine.low %v313_v0, %v320_v1  ;;  %v1359_v28 = vcombine.high %v313_v0, %v320_v1  ;;  %v1662_v50 = vmov 0.0  }
  0xe8   : > { %v1983_v10 = vrot.slane %v1100_v24, %v1834_v21  ;;  %v1116_v11 = vcombine.low %v1091_v22, %v1099_v23  ;;  %v1115_v29 = vrot.slane %v1101_v25, %v1834_v21  ;;  %v1117_v30 = vcombine.high %v1091_v22, %v1099_v23  ;;  %1395 = vmatprep.subr.bf16.mxu0 %v1662_v50 }
  0xe9   : > { %v364_v12 = vrot.slane %v357_v27, %v1832_v14  ;;  %v372_v13 = vrot.slane %v1359_v28, %v1832_v14  ;;  %v373_v32 = vcombine.low %v347_v20, %v354_v26  ;;  %v1360_v33 = vcombine.high %v347_v20, %v354_v26  ;;  %1396 = vmatpush3.bf16.msra.mxu0 %v1516_v35 }
  0xea   : > { %v1989_v37 = vrot.slane %v1116_v11, %v1834_v21  ;;  %v1131_v31 = vrot.slane %v1117_v30, %v1834_v21  ;;  %1397 = vmatprep.subr.bf16.mxu0 %v1662_v50  ;;  %1403 = vmatprep.mubr.msk.bf16.mxu0 %vm1663_vm2, %v1662_v50 }
  0xeb   : > { %1512 = vrot.lane.b32.xlu0 %v1511_v19, %s1661_s10  ;;  %v380_v38 = vrot.slane %v373_v32, %v1832_v14  ;;  %v388_v39 = vrot.slane %v1360_v33, %v1832_v14  ;;  %v389_v40 = vcombine.low %v364_v12, %v372_v13  ;;  %v390_v41 = vcombine.high %v364_v12, %v372_v13  ;;  %v1376_v12 = vld [vmem:[%s2108_s2] ss:$0 sm:$0xff] }
  0xec   : > { %v1133_v42 = vcombine.high %v1983_v10, %v1989_v37  ;;  %v1132_v45 = vcombine.low %v1983_v10, %v1989_v37  ;;  %v1134_v46 = vcombine.low %v1115_v29, %v1131_v31  ;;  %v1135_v51 = vcombine.high %v1115_v29, %v1131_v31 }
  0xed   : > { %v2000_v34 = vrot.slane %v389_v40, %v1834_v21  ;;  %v405_v2 = vcombine.low %v380_v38, %v388_v39  ;;  %v406_v47 = vcombine.high %v380_v38, %v388_v39  ;;  %v404_v14 = vrot.slane %v390_v41, %v1834_v21 }
  0xee   : > { %1137 = vrot.lane.b32.xlu1 %v1133_v42, %s1659_s27 }
  0xef   : > { %1141 = vrot.lane.b32.xlu0 %v1134_v46, %s1660_s29  ;;  %v413_v48 = vrot.slane %v405_v2, %v1834_v21  ;;  %v420_v49 = vrot.slane %v406_v47, %v1834_v21  ;;  %v1517_v21 = vld [vmem:[%s2107_s1 + $0x8] sm:$0xff]  }
  0xf0   : > { %1398 = vmatpush3.bf16.msra.mxu0 %v1517_v21 }
  0xf1   : > { %v422_v52 = vcombine.high %v2000_v34, %v413_v48  ;;  %v421_v53 = vcombine.low %v2000_v34, %v413_v48  ;;  %v423_v3 = vcombine.low %v404_v14, %v420_v49  ;;  %v424_v55 = vcombine.high %v404_v14, %v420_v49  ;;  %1399 = vmatprep.subr.bf16.mxu0 %v1662_v50 }
  0xf2   : > { %1145 = vrot.lane.b32.xlu1 %v1135_v51, %s1661_s10 }
  0xf3   : > { %426 = vrot.lane.b32.xlu0 %v422_v52, %s1659_s27  ;;  %s1356_s27 = sshll.u32 %s1814_s7, 3 }
  0xf4   : > { %1400 = vmatpush3.bf16.msra.mxu0 %v1518_v61  ;;  %s205_s23 = scalar_lea.vmem [#allocation6], %s1356_s27 }
  0xf5   : > { %1401 = vmatprep.subr.bf16.mxu0 %v1662_v50  ;;  %s1262_s26 = sshll.u32 %s205_s23, 4  ;;  %s2054_s26 = int_to_ptr.vmem [resolvable:$true] %s1262_s26 }
  0xf6   : > { %430 = vrot.lane.b32.xlu1 %v423_v3, %s1660_s29  ;;  %s1383_s29 = sshll.u32 %s1636_s16, 1  ;;  %s1550_s16 = scalar_lea.vmem %s2054_s26, 128 }
  0xf7   : > { %434 = vrot.lane.b32.xlu0 %v424_v55, %s1661_s10  ;;  %s1258_s10 = sadd.s32 %s1632_s15, %s1383_s29  ;;  %s1247_s15 = scalar_lea.sflag [#allocation5], %s1814_s7 }
  0xf8   : > { %1402 = vmatpush3.bf16.msra.mxu0 %v1519_v4  ;;  %s1384_s30 = sshll.u32 %s1258_s10, 7  ;;  %p1551_p8 = scmp.ne.s32.totalorder %s2054_s26, %s1550_s16 }
  0xf9   : > { %s2052_s5 = scalar_lea.hbm %s2109_s3, %s1384_s30 }
  0xfa   : > { %p1552_p12 = pnand %p1551_p8, %p2118_p9 }
  0xfc   : > { %p1553_p0 = pneg %p1552_p12 }
 0x159   : > { %v1503_v56 = vpop.permute.xlu0 %1502  ;;  %v1508_v57 = vpop.permute.xlu1 %1507 }
 0x15a   : > { %v1505_v59 = vunpack.i.h.bf16 %v1503_v56  ;;  %v1504_v60 = vunpack.i.l.bf16 %v1503_v56  ;;  %v1510_v62 = vunpack.i.h.bf16 %v1508_v57  ;;  %v1509_v63 = vunpack.i.l.bf16 %v1508_v57 }
 0x15c   : > { %v910_v0 = vsel %vm437_vm0, %v894_v5, %v1505_v59  ;;  %v672_v1 = vsel %vm437_vm0, %v656_v36, %v1504_v60 }
 0x15d   : > { %v1513_v6 = vpop.permute.xlu0 %1512  ;;  %v911_v54 = vsel %vm439_vm1, %v910_v0, %v1510_v62  ;;  %v673_v58 = vsel %vm439_vm1, %v672_v1, %v1509_v63 }
 0x15e   : > { %v1515_v7 = vunpack.i.h.bf16 %v1513_v6  ;;  %v1514_v15 = vunpack.i.l.bf16 %v1513_v6 }
 0x160   : > { %v1138_v5 = vpop.permute.xlu1 %1137  ;;  %v912_v43 = vsel %vm441_vm3, %v911_v54, %v1515_v7  ;;  %v674_v44 = vsel %vm441_vm3, %v673_v58, %v1514_v15 }
 0x161   : > { %v1148_v36 = vsel %vm437_vm0, %v1132_v45, %v1138_v5  ;;  %v1142_v8 = vpop.permute.xlu0 %1141  ;;  %v1388_v16 = vpack.c.bf16 %v912_v43, %v912_v43  ;;  %v1387_v9 = vpack.c.bf16 %v674_v44, %v674_v44 }
 0x162   : > { %v1149_v17 = vsel %vm439_vm1, %v1148_v36, %v1142_v8 }
 0x163   : > { %917 = vrot.lane.b32.xlu0 %v1388_v16, %s1664_s11  ;;  %679 = vrot.lane.b32.xlu1 %v1387_v9, %s1665_s25  ;;  %s1667_s11 = smov [#allocation6]  }
 0x164   : > { %v1146_v18 = vpop.permute.xlu1 %1145  ;;  %s1554_s25 = sshll.u32 %s1667_s11, 4  ;;  %s1555_s25 = int_to_ptr.vmem [resolvable:$false] %s1554_s25 }
 0x165   : > { %v1150_v19 = vsel %vm441_vm3, %v1149_v17, %v1146_v18  ;;  %v427_v20 = vpop.permute.xlu0 %426  ;;  %p1557_p11 = scmp.lt.s32.totalorder %s2054_s26, %s1555_s25 }
 0x166   : > { %v1389_v22 = vpack.c.bf16 %v1150_v19, %v1150_v19  ;;  %v438_v23 = vsel %vm437_vm0, %v421_v53, %v427_v20 }
 0x168   : > { %v431_v24 = vpop.permute.xlu1 %430  ;;  %1155 = vrot.lane.b32.xlu1 %v1389_v22, %s1666_s24  ;;  %s1556_s24 = scalar_lea.vmem %s1555_s25, 256 }
 0x169   : > { %v440_v25 = vsel %vm439_vm1, %v438_v23, %v431_v24  ;;  %v435_v26 = vpop.permute.xlu0 %434  ;;  %p1558_p13 = scmp.lt.s32.totalorder %s1556_s24, %s1550_s16 }
 0x16a   : > { %v442_v27 = vsel %vm441_vm3, %v440_v25, %v435_v26 }
 0x16b   : > { %v443_v28 = vpack.c.bf16 %v442_v27, %v442_v27  ;;  %p1559_p1 = por %p1558_p13, %p1557_p11 }
 0x16d   : > { %445 = vst.msk [vmem:[#allocation2] sm:$0xf] %vm444_vm4, %v443_v28  ;;  %p1560_p4 = pnand %p1559_p1, %p1553_p0 }
 0x1d5   : > { %v918_v10 = vpop.permute.xlu0 %917  ;;  %v680_v11 = vpop.permute.xlu1 %679 }
 0x1d6   : > { %683 = vst.msk [vmem:[#allocation2] sm:$0xf] %vm682_vm5, %v680_v11 }
 0x1d7   : > { %921 = vst.msk [vmem:[#allocation2] sm:$0xf] %vm920_vm6, %v918_v10 }
 0x1da   : > { %v1156_v29 = vpop.permute.xlu1 %1155 }
 0x1db   : > { %1159 = vst.msk [vmem:[#allocation2] sm:$0xf] %vm1158_vm7, %v1156_v29 }
 0x1e2   : > { %v1160_v30 = vld [vmem:[#allocation2] sm:$0xf] }
 0x1e3   : > { %1404 = vmatmul.mubr.msk.bf16.vlgmr.msra.gmra.mrb[0].mxu0 %vm1200_vm8, %v1160_v30 }
 0x2b6   : > { %v1238_v13 = vpop.f32.mrb[0].mxu0 }
 0x2b7   : > { %v1239_v32 = vadd.f32 %v1376_v12, %v1238_v13  ;;  %v1405_v33 = vpop.f32.mrb[1].mxu0 }
 0x2b8   : > { %v1241_v37 = vpop.f32.mrb[2].mxu0 }
 0x2b9   : > { %v1406_v31 = vpop.f32.mrb[3].mxu0  ;;  %1245 = vst.msk [vmem:[%s205_s23] sm:$0xff] %vm1244_vm9, %v1239_v32 }
 0x2ba   : > { %1563 = shalt.err (!%p1560_p4)
}
 0x2bb   : > { %s1564_s7 = scalar_lea.hbm %s2052_s5, 128  ;;  %s1568_s10 = scalar_lea.hbm %s2109_s3, 512 }
 0x2bc   : > { %p1565_p3 = scmp.ne.s32.totalorder %s2052_s5, %s1564_s7  ;;  %p1569_p2 = scmp.lt.u32.totalorder %s2052_s5, %s2109_s3 }
 0x2bd   : > { %p1570_p5 = scmp.lt.u32.totalorder %s1568_s10, %s1564_s7  ;;  %p1572_p8 = scmp.lt.u32.totalorder %s1564_s7, %s2052_s5 }
 0x2be   : > { %p1566_p6 = pnand %p1565_p3, %p2118_p9 }
 0x2bf   : > { %p1571_p10 = por %p1570_p5, %p1569_p2 }
 0x2c0   : > { %p1567_p7 = pneg %p1566_p6 }
 0x2c1   : > { %p1573_p12 = por %p1572_p8, %p1571_p10 }
 0x2c3   : > { %p1574_p0 = pnand %p1573_p12, %p1567_p7 }
 0x2c5   : > { %1577 = shalt.err (!%p1574_p0)
}
 0x2c6   : > { %1409 = dma.vmem_to_hbm [thread:$0]  (%p2118_p9), %s2054_s26, 128, %s2052_s5, %s1247_s15  }
 0x2c7 PF: > { %p1420_p11 = scmp.ge.s32.totalorder %s1648_s19, 2  ;;  %s1274_s30 = sand.u32 1, %s1620_s12  }
 0x2c8   : > { %p2119_p13 = scmp.ne.s32.totalorder %s2116_s4, 0  ;;  %s1275_s23 = scalar_lea.sflag [#allocation5], %s1274_s30 }
 0x2ca   : > { %p1416_p1 = pnand %p1420_p11, %p2119_p13 }
 0x2cc   : > { %1615 = dma.done.wait (!%p1416_p1), %s1275_s23, 128  }
 0x2cd   : > { %1617 = vsyncadd (!%p1416_p1), %s1275_s23, 4294967168  ;;  %s19_s19 = sadd.s32 1, %s1648_s19   ;;  %s2120_s28 = sld [smem:[#allocation9_spill]] }
 0x2ce   : > { %p16_p4 = scmp.ge.s32.totalorder %s19_s19, 6   ;;  %s2121_s12 = smov %s1624_s13 }
 0x2cf   : > { %s2122_s13 = smov %s1628_s14  ;;  %s2123_s14 = smov %s1766_s6 }
 0x2d0   : > { %s2124_s15 = smov %s1640_s17  ;;  %s2125_s16 = smov %s1644_s18 }
 0x2d1   : > { %s2126_s17 = smov %s2129_s22  ;;  %18 = sbr.rel (!%p16_p4) target bundleno = 7 (0x7), region = 77 }
 0x2d3   : > { %s2127_s18 = smov %s2120_s28 }
 0x2d8   :  { %1280 = vsyncpa [#allocation4], 1 }
 0x2d9   :  { %1282 = vsyncpa [#allocation4 + $0x1], 1 }
 0x2da   :  { %1283 = vsyncpa [#allocation5], 1 }
 0x2db   :  { %1285 = vsyncpa [#allocation5 + $0x1], 1 }

</bundles_post_ra>
